<compile_context>
chip_gen: v5e
topology: v5e:2x2
jax: 0.10.0
libtpu: 0.0.40
codegen_flags: <defaults>
</compile_context>

<pallas_src>
import functools

import jax
import jax.numpy as jnp
from jax import lax
from jax.experimental import pallas as pl
from jax.experimental.pallas import tpu as pltpu


def _round_up(x, m):
    return (x + m - 1) // m * m


def _sublane_multiple(dtype):
    """Second-minor block dim must be a multiple of this for the given dtype."""
    itemsize = jnp.dtype(dtype).itemsize
    return max(8, 32 // itemsize)  # 8 for f32, 16 for bf16, 32 for int8


# --------------------------------------------------------------------------- #
# Fast path: embedding table resident in VMEM, per-row VMEM reads.
# --------------------------------------------------------------------------- #
def _vmem_gather_kernel(ids_ref, emb_ref, out_ref, *, tokens_per_block):
    tb = tokens_per_block
    base = pl.program_id(0) * tb

    def _copy_row(t, carry):
        row = ids_ref[base + t]                       # scalar id from SMEM
        out_ref[pl.ds(t, 1), :] = emb_ref[pl.ds(row, 1), :]
        return carry

    lax.fori_loop(0, tb, _copy_row, 0, unroll=8)


# --------------------------------------------------------------------------- #
# Large-vocab path: table stays in HBM, rows DMA'd straight into out_ref with
# a rolling window of W in-flight DMAs.
# --------------------------------------------------------------------------- #
def _hbm_gather_kernel(ids_ref, emb_hbm, out_ref, sems, *, tokens_per_block,
                       window):
    tb = tokens_per_block
    W = window                                        # python int, power of 2
    base = pl.program_id(0) * tb

    def _dma(token, slot):
        row = ids_ref[base + token]
        return pltpu.make_async_copy(
            emb_hbm.at[pl.ds(row, 1), :],
            out_ref.at[pl.ds(token, 1), :],
            sems.at[slot],
        )

    # Prologue: fill the in-flight window (static python loop, fully unrolled).
    for t in range(W):
        _dma(t, t).start()

    # Steady state: before reusing slot t % W, retire the DMA that used it
    # (token t - W), then issue token t.  Both SMEM id reads happen before the
    # wait (keeps SMEM sst->sld forwarding).  The waited descriptor is rebuilt
    # with identical src/dst.
    if tb > W:
        def _steady(t, carry):
            slot = t & (W - 1)
            cur = _dma(t, slot)          # reads ids_ref[base + t]
            prev = _dma(t - W, slot)     # identical src/dst as the one started
            prev.wait()
            cur.start()
            return carry

        lax.fori_loop(W, tb, _steady, 0, unroll=8)

    # Epilogue: retire the last W DMAs (static loop).
    for t in range(tb - W, tb):
        _dma(t, t % W).wait()


# --------------------------------------------------------------------------- #
# Wrapper
# --------------------------------------------------------------------------- #
def glove_text_encoder(word_ids, emb_table, *, block_tokens=512,
                       vmem_table_bytes_limit=12 * 1024 * 1024,
                       dma_window=16):
    """Pallas equivalent of GloveTextEncoder.forward: emb_table[word_ids].

    word_ids:  (B, L) integer array of token ids.
    emb_table: (vocab, dim) frozen GloVe embedding matrix.
    returns:   (B, L, dim)
    """
    B, L = word_ids.shape
    vocab, D = emb_table.shape
    n_tok = B * L
    itemsize = jnp.dtype(emb_table.dtype).itemsize
    sub = _sublane_multiple(emb_table.dtype)

    # Tokens per grid step: large enough to amortize per-step overhead, but
    # capped so the grid has >= 2 steps when possible (v7x has 2 TCs).
    half = -(-n_tok // 2)                      # ceil(n_tok / 2)
    tb = min(block_tokens, max(half, 1))
    tb = _round_up(tb, sub)
    n_pad = _round_up(n_tok, tb)

    ids = word_ids.reshape(-1).astype(jnp.int32)
    if n_pad != n_tok:
        ids = jnp.pad(ids, (0, n_pad - n_tok))  # pad tokens gather row 0

    grid = (n_pad // tb,)
    out_shape = jax.ShapeDtypeStruct((n_pad, D), emb_table.dtype)
    out_spec = pl.BlockSpec((tb, D), lambda i, ids_smem: (i, 0))

    table_bytes = vocab * D * itemsize
    if table_bytes <= vmem_table_bytes_limit:
        # VMEM-resident fast path: table loaded once (constant index_map).
        kernel = functools.partial(_vmem_gather_kernel, tokens_per_block=tb)
        in_specs = [pl.BlockSpec((vocab, D), lambda i, ids_smem: (0, 0))]
        scratch_shapes = []
    else:
        # HBM gather path with a rolling DMA window.
        W = min(dma_window, tb)
        W = 1 << (W.bit_length() - 1)          # largest power of two <= W
        kernel = functools.partial(_hbm_gather_kernel, tokens_per_block=tb,
                                   window=W)
        in_specs = [pl.BlockSpec(memory_space=pl.ANY)]   # table stays in HBM
        scratch_shapes = [pltpu.SemaphoreType.DMA((W,))]

    out = pl.pallas_call(
        kernel,
        out_shape=out_shape,
        grid_spec=pltpu.PrefetchScalarGridSpec(
            num_scalar_prefetch=1,             # word ids -> SMEM
            grid=grid,
            in_specs=in_specs,
            out_specs=out_spec,
            scratch_shapes=scratch_shapes,
        ),
        compiler_params=pltpu.CompilerParams(
            dimension_semantics=("parallel",)),
    )(ids, emb_table)

    if n_pad != n_tok:
        out = out[:n_tok]
    return out.reshape(B, L, D)


if __name__ == "__main__":
    # Small shapes consistent with the module: B=2 sentences of L=8 word ids,
    # a 128-word vocabulary with 32-dim GloVe-like vectors.
    B, L = 2, 8
    vocab_size, dim = 128, 32

    key = jax.random.PRNGKey(0)
    k_emb, k_ids = jax.random.split(key)
    emb_table = jax.random.normal(k_emb, (vocab_size, dim), jnp.float32)
    word_ids = jax.random.randint(k_ids, (B, L), 0, vocab_size, dtype=jnp.int32)

    ref = jnp.take(emb_table, word_ids, axis=0)        # emb_table[word_ids]

    # 1) VMEM-resident fast path (small table fits on-chip).
    out_fast = jax.block_until_ready(glove_text_encoder(word_ids, emb_table))
    assert out_fast.shape == (B, L, dim)
    assert jnp.allclose(out_fast, ref), (
        f"fast path max abs diff {jnp.max(jnp.abs(out_fast - ref))}")

    # 2) Large-vocab HBM-gather path (forced, to exercise the DMA kernel).
    out_hbm = jax.block_until_ready(
        glove_text_encoder(word_ids, emb_table, vmem_table_bytes_limit=0))
    assert out_hbm.shape == (B, L, dim)
    assert jnp.allclose(out_hbm, ref), (
        f"hbm path max abs diff {jnp.max(jnp.abs(out_hbm - ref))}")

    print("KERNEL_OK")
</pallas_src>

<mosaic_0001>
module attributes {stable_mosaic.version = 11 : i64} {
  func.func @_vmem_gather_kernel(%arg0: i32, %arg1: memref<16xi32, #tpu.memory_space<smem>>, %arg2: memref<128x32xf32, #tpu.memory_space<vmem>>, %arg3: memref<8x32xf32, #tpu.memory_space<vmem>>) attributes {dimension_semantics = [#tpu.dimension_semantics<parallel>], iteration_bounds = array<i64: 2>, scalar_prefetch = 1 : i64, scratch_operands = 0 : i64, tpu.core_type = #tpu.core_type<tc>, window_params = [{pipeline_mode = #tpu.pipeline_mode<synchronous>, transform_indices = @transform_0, window_bounds = array<i64: 128, 32>}, {transform_indices = @transform_1, window_bounds = array<i64: 8, 32>}]} {
    %c8_i32 = arith.constant 8 : i32
    %0 = arith.muli %arg0, %c8_i32 : i32
    %c0_i32 = arith.constant 0 : i32
    %1 = arith.addi %0, %c0_i32 : i32
    %2 = arith.index_cast %1 : i32 to index
    %3 = memref.load %arg1[%2] : memref<16xi32, #tpu.memory_space<smem>>
    %4 = arith.index_cast %3 : i32 to index
    %c0 = arith.constant 0 : index
    %5 = vector.load %arg2[%4, %c0] : memref<128x32xf32, #tpu.memory_space<vmem>>, vector<1x32xf32>
    %6 = arith.index_cast %c0_i32 : i32 to index
    %c0_0 = arith.constant 0 : index
    %7 = vector.load %arg3[%6, %c0_0] : memref<8x32xf32, #tpu.memory_space<vmem>>, vector<1x32xf32>
    tpu.vector_store %arg3[%6, %c0_0], %5 {strides = array<i32>} : memref<8x32xf32, #tpu.memory_space<vmem>>, vector<1x32xf32>,
    %c1_i32 = arith.constant 1 : i32
    %8 = arith.addi %0, %c1_i32 : i32
    %9 = arith.index_cast %8 : i32 to index
    %10 = memref.load %arg1[%9] : memref<16xi32, #tpu.memory_space<smem>>
    %11 = arith.index_cast %10 : i32 to index
    %c0_1 = arith.constant 0 : index
    %12 = vector.load %arg2[%11, %c0_1] : memref<128x32xf32, #tpu.memory_space<vmem>>, vector<1x32xf32>
    %13 = arith.index_cast %c1_i32 : i32 to index
    %c0_2 = arith.constant 0 : index
    %14 = vector.load %arg3[%13, %c0_2] : memref<8x32xf32, #tpu.memory_space<vmem>>, vector<1x32xf32>
    tpu.vector_store %arg3[%13, %c0_2], %12 {strides = array<i32>} : memref<8x32xf32, #tpu.memory_space<vmem>>, vector<1x32xf32>,
    %c2_i32 = arith.constant 2 : i32
    %15 = arith.addi %0, %c2_i32 : i32
    %16 = arith.index_cast %15 : i32 to index
    %17 = memref.load %arg1[%16] : memref<16xi32, #tpu.memory_space<smem>>
    %18 = arith.index_cast %17 : i32 to index
    %c0_3 = arith.constant 0 : index
    %19 = vector.load %arg2[%18, %c0_3] : memref<128x32xf32, #tpu.memory_space<vmem>>, vector<1x32xf32>
    %20 = arith.index_cast %c2_i32 : i32 to index
    %c0_4 = arith.constant 0 : index
    %21 = vector.load %arg3[%20, %c0_4] : memref<8x32xf32, #tpu.memory_space<vmem>>, vector<1x32xf32>
    tpu.vector_store %arg3[%20, %c0_4], %19 {strides = array<i32>} : memref<8x32xf32, #tpu.memory_space<vmem>>, vector<1x32xf32>,
    %c3_i32 = arith.constant 3 : i32
    %22 = arith.addi %0, %c3_i32 : i32
    %23 = arith.index_cast %22 : i32 to index
    %24 = memref.load %arg1[%23] : memref<16xi32, #tpu.memory_space<smem>>
    %25 = arith.index_cast %24 : i32 to index
    %c0_5 = arith.constant 0 : index
    %26 = vector.load %arg2[%25, %c0_5] : memref<128x32xf32, #tpu.memory_space<vmem>>, vector<1x32xf32>
    %27 = arith.index_cast %c3_i32 : i32 to index
    %c0_6 = arith.constant 0 : index
    %28 = vector.load %arg3[%27, %c0_6] : memref<8x32xf32, #tpu.memory_space<vmem>>, vector<1x32xf32>
    tpu.vector_store %arg3[%27, %c0_6], %26 {strides = array<i32>} : memref<8x32xf32, #tpu.memory_space<vmem>>, vector<1x32xf32>,
    %c4_i32 = arith.constant 4 : i32
    %29 = arith.addi %0, %c4_i32 : i32
    %30 = arith.index_cast %29 : i32 to index
    %31 = memref.load %arg1[%30] : memref<16xi32, #tpu.memory_space<smem>>
    %32 = arith.index_cast %31 : i32 to index
    %c0_7 = arith.constant 0 : index
    %33 = vector.load %arg2[%32, %c0_7] : memref<128x32xf32, #tpu.memory_space<vmem>>, vector<1x32xf32>
    %34 = arith.index_cast %c4_i32 : i32 to index
    %c0_8 = arith.constant 0 : index
    %35 = vector.load %arg3[%34, %c0_8] : memref<8x32xf32, #tpu.memory_space<vmem>>, vector<1x32xf32>
    tpu.vector_store %arg3[%34, %c0_8], %33 {strides = array<i32>} : memref<8x32xf32, #tpu.memory_space<vmem>>, vector<1x32xf32>,
    %c5_i32 = arith.constant 5 : i32
    %36 = arith.addi %0, %c5_i32 : i32
    %37 = arith.index_cast %36 : i32 to index
    %38 = memref.load %arg1[%37] : memref<16xi32, #tpu.memory_space<smem>>
    %39 = arith.index_cast %38 : i32 to index
    %c0_9 = arith.constant 0 : index
    %40 = vector.load %arg2[%39, %c0_9] : memref<128x32xf32, #tpu.memory_space<vmem>>, vector<1x32xf32>
    %41 = arith.index_cast %c5_i32 : i32 to index
    %c0_10 = arith.constant 0 : index
    %42 = vector.load %arg3[%41, %c0_10] : memref<8x32xf32, #tpu.memory_space<vmem>>, vector<1x32xf32>
    tpu.vector_store %arg3[%41, %c0_10], %40 {strides = array<i32>} : memref<8x32xf32, #tpu.memory_space<vmem>>, vector<1x32xf32>,
    %c6_i32 = arith.constant 6 : i32
    %43 = arith.addi %0, %c6_i32 : i32
    %44 = arith.index_cast %43 : i32 to index
    %45 = memref.load %arg1[%44] : memref<16xi32, #tpu.memory_space<smem>>
    %46 = arith.index_cast %45 : i32 to index
    %c0_11 = arith.constant 0 : index
    %47 = vector.load %arg2[%46, %c0_11] : memref<128x32xf32, #tpu.memory_space<vmem>>, vector<1x32xf32>
    %48 = arith.index_cast %c6_i32 : i32 to index
    %c0_12 = arith.constant 0 : index
    %49 = vector.load %arg3[%48, %c0_12] : memref<8x32xf32, #tpu.memory_space<vmem>>, vector<1x32xf32>
    tpu.vector_store %arg3[%48, %c0_12], %47 {strides = array<i32>} : memref<8x32xf32, #tpu.memory_space<vmem>>, vector<1x32xf32>,
    %c7_i32 = arith.constant 7 : i32
    %50 = arith.addi %0, %c7_i32 : i32
    %51 = arith.index_cast %50 : i32 to index
    %52 = memref.load %arg1[%51] : memref<16xi32, #tpu.memory_space<smem>>
    %53 = arith.index_cast %52 : i32 to index
    %c0_13 = arith.constant 0 : index
    %54 = vector.load %arg2[%53, %c0_13] : memref<128x32xf32, #tpu.memory_space<vmem>>, vector<1x32xf32>
    %55 = arith.index_cast %c7_i32 : i32 to index
    %c0_14 = arith.constant 0 : index
    %56 = vector.load %arg3[%55, %c0_14] : memref<8x32xf32, #tpu.memory_space<vmem>>, vector<1x32xf32>
    tpu.vector_store %arg3[%55, %c0_14], %54 {strides = array<i32>} : memref<8x32xf32, #tpu.memory_space<vmem>>, vector<1x32xf32>,
    %c8_i32_15 = arith.constant 8 : i32
    return
  }
  func.func @transform_0(%arg0: i32, %arg1: memref<16xi32, #tpu.memory_space<smem>>) -> (i32, i32) {
    %c0_i32 = arith.constant 0 : i32
    %c0_i32_0 = arith.constant 0 : i32
    %c0_i32_1 = arith.constant 0 : i32
    return %c0_i32, %c0_i32_0 : i32, i32
  }
  func.func @transform_1(%arg0: i32, %arg1: memref<16xi32, #tpu.memory_space<smem>>) -> (i32, i32) {
    %c0_i32 = arith.constant 0 : i32
    %c0_i32_0 = arith.constant 0 : i32
    return %arg0, %c0_i32 : i32, i32
  }
}

</mosaic_0001>

<bundles_post_ra>
// kernel: tpu_custom_call.1
= control target key start
LH: loop header
LB: loop body
LE: loop exit
PB: predicated region body
PF: predicated region fallthrough
CT: control target
= control target key end

     0   :  { %s343_s12 = smov [#allocation3]   ;;  %s496_s0 = inlined_call_operand.vmem [shape: s32[16], index: 0, kind: input, shape index: {}]   ;;  %s497_s1 = inlined_call_operand.vmem [shape: f32[128,32], index: 1, kind: input, shape index: {}]   ;;  %s498_s2 = inlined_call_operand.hbm [shape: f32[16,32], index: 2, kind: output, shape index: {}]  }
   0x1   :  { %s8_s11 = sshll.u32 %s496_s0, 4  ;;  %s9_s11 = int_to_ptr.vmem [resolvable:$true] %s8_s11 }
   0x2   :  { %11 = dma.vmem_to_smem %s9_s11, 16, %s343_s12, [#allocation2] }
   0x3   :  { %321 = dma.done.wait [#allocation2], 16 }
   0x4   :  { %322 = vsyncadd [#allocation2], 4294967280 }
   0x5   :  { %14 = sfence }
   0x6   :  { %15 = vsyncpa [#allocation5], 0 }
   0x7   :  { %17 = vsyncpa [#allocation5 + $0x1], 0  ;;  %s362_s13 = smov 0   ;;  %s364_s14 = smov 0  }
   0x8   :  { %s366_s15 = smov 0   ;;  %s368_s16 = smov 0  }
   0x9 LB: > { %s215_s0 = sadd.s32 4294967295, %s341_s16   ;;  %s216_s17 = sadd.s32 4294967294, %s341_s16   ;;  %s341_s16 = sphi %s368_s16, %s506_s16   ;;  %s337_s15 = sphi %s366_s15, %s505_s15   ;;  %s333_s14 = sphi %s364_s14, %s504_s14   ;;  %s329_s13 = sphi %s362_s13, %s503_s13  }
   0xa   : > { %s385_s18 = sadd.s32 1, %s341_s16   ;;  %s51_s19 = sadd.s32 1, %s337_s15 }
   0xb   : > { %s48_s20 = ssub.s32 %s341_s16, %s385_s18  ;;  %p61_p0 = scmp.ne.s32.totalorder %s337_s15, %s333_s14 }
   0xc   : > { %p49_p1 = scmp.eq.s32.totalorder %s48_s20, 0  ;;  %p62_p2 = scmp.eq.s32.totalorder %s215_s0, 1 }
   0xd   : > { %p67_p3 = scmp.ne.s32.totalorder %s333_s14, %s329_s13  ;;  %p68_p4 = scmp.eq.s32.totalorder %s216_s17, 1 }
   0xe   : > { %s395_s21 = scalar_select %p49_p1, %s337_s15, %s51_s19  }
   0xf   : > { %p397_p5 = por %p62_p2, %p61_p0  ;;  %p401_p6 = por %p68_p4, %p67_p3 }
  0x10   : > { %p218_p7 = scmp.ge.s32.totalorder %s341_s16, 1  ;;  %p89_p8 = scmp.lt.s32.totalorder %s341_s16, 3 }
  0x12   : > { %p90_p9 = pnand %p218_p7, %p89_p8 }
  0x13   : > { %s499_s24 = sand.u32 (!%p90_p9), 1, %s333_s14   ;;  %s408_s25 = sshll.u32 (!%p90_p9), %s215_s0, 3 }
  0x14   : > { %93 = sbr.rel (%p90_p9) target bundleno = 47 (0x2f), region = 24  ;;  %s219_s26 = sshll.u32 (!%p90_p9), %s499_s24, 3 }
  0x15   : > { %s105_s27 = sld [smem:[#allocation3 + %s408_s25]] (!%p90_p9)  ;;  %s110_s28 = sadd.s32 (!%p90_p9), 1, %s408_s25 }
  0x16   : > { %s115_s29 = sadd.s32 (!%p90_p9), 2, %s408_s25  ;;  %s111_s30 = sld [smem:[#allocation3 + %s110_s28]] (!%p90_p9) }
  0x17   : > { %s120_s3 = sadd.s32 (!%p90_p9), 3, %s408_s25  ;;  %s116_s4 = sld [smem:[#allocation3 + %s115_s29]] (!%p90_p9) }
  0x18   : > { %s125_s5 = sadd.s32 (!%p90_p9), 4, %s408_s25  ;;  %s121_s6 = sld [smem:[#allocation3 + %s120_s3]] (!%p90_p9) }
  0x19   : > { %vm108_vm0 = vcmask 253952   ;;  %s130_s7 = sadd.s32 5, %s408_s25  ;;  %s126_s11 = sld [smem:[#allocation3 + %s125_s5]] }
  0x1a   : > { %s131_s12 = sld [smem:[#allocation3 + %s130_s7]]  ;;  %s135_s0 = sadd.s32 6, %s408_s25 }
  0x1b   : > { %s106_s10 = scalar_lea.vmem %s497_s1, %s105_s27  ;;  %s422_s17 = scalar_lea.vmem [#allocation4], %s219_s26 }
  0x1c   : > { %v107_v0 = vld [vmem:[%s106_s10] sm:$0x1]  ;;  %s136_s19 = sld [smem:[#allocation3 + %s135_s0]]  ;;  %s140_s20 = sadd.s32 7, %s408_s25 }
  0x1d   : > { %109 = vst.msk [vmem:[%s422_s17] sm:$0x1] %vm108_vm0, %v107_v0  ;;  %s112_s3 = scalar_lea.vmem %s497_s1, %s111_s30  ;;  %s141_s27 = sld [smem:[#allocation3 + %s140_s20]] }
  0x1e   : > { %v113_v1 = vld [vmem:[%s112_s3] sm:$0x1]  ;;  %s117_s26 = scalar_lea.vmem %s497_s1, %s116_s4  ;;  %s156_s10 = scalar_lea.hbm %s498_s2, %s408_s25 }
  0x1f   : > { %114 = vst.msk [vmem:[%s422_s17 + $0x1] sm:$0x1] %vm108_vm0, %v113_v1  ;;  %v118_v2 = vld [vmem:[%s117_s26] sm:$0x1]  ;;  %s122_s28 = scalar_lea.vmem %s497_s1, %s121_s6  ;;  %s158_s30 = sshll.u32 %s422_s17, 4  ;;  %s159_s30 = int_to_ptr.vmem [resolvable:$true] %s158_s30 }
  0x20   : > { %119 = vst.msk [vmem:[%s422_s17 + $0x2] sm:$0x1] %vm108_vm0, %v118_v2  ;;  %v123_v3 = vld [vmem:[%s122_s28] sm:$0x1]  ;;  %s127_s4 = scalar_lea.vmem %s497_s1, %s126_s11  ;;  %s132_s5 = scalar_lea.vmem %s497_s1, %s131_s12 }
  0x21   : > { %124 = vst.msk [vmem:[%s422_s17 + $0x3] sm:$0x1] %vm108_vm0, %v123_v3  ;;  %v128_v4 = vld [vmem:[%s127_s4] sm:$0x1]  ;;  %s160_s24 = sshll.u32 %s156_s10, 4  ;;  %s502_s12 = sand.u32 1, %s333_s14   ;;  %s161_s24 = int_to_ptr.hbm [resolvable:$true] %s160_s24 }
  0x22   : > { %129 = vst.msk [vmem:[%s422_s17 + $0x4] sm:$0x1] %vm108_vm0, %v128_v4  ;;  %v133_v5 = vld [vmem:[%s132_s5] sm:$0x1]  ;;  %s137_s26 = scalar_lea.vmem %s497_s1, %s136_s19  ;;  %s146_s10 = scalar_lea.sflag [#allocation5], %s502_s12 }
  0x23   : > { %134 = vst.msk [vmem:[%s422_s17 + $0x5] sm:$0x1] %vm108_vm0, %v133_v5  ;;  %v138_v6 = vld [vmem:[%s137_s26] sm:$0x1]  ;;  %s142_s9 = scalar_lea.vmem %s497_s1, %s141_s27  ;;  %s291_s0 = sshra.s32 %s161_s24, 4  ;;  %s292_s0 = int_to_ptr.hbm [resolvable:$true] %s291_s0 }
  0x24   : > { %139 = vst.msk [vmem:[%s422_s17 + $0x6] sm:$0x1] %vm108_vm0, %v138_v6  ;;  %v143_v7 = vld [vmem:[%s142_s9] sm:$0x1]  ;;  %s293_s28 = scalar_lea.hbm %s292_s0, 8  ;;  %s297_s29 = scalar_lea.hbm %s498_s2, 16 }
  0x25   : > { %144 = vst.msk [vmem:[%s422_s17 + $0x7] sm:$0x1] %vm108_vm0, %v143_v7  ;;  %p294_p10 = scmp.ne.s32.totalorder %s292_s0, %s293_s28  ;;  %p298_p13 = scmp.lt.s32.totalorder %s292_s0, %s498_s2 }
  0x26   : > { %p299_p0 = scmp.lt.s32.totalorder %s297_s29, %s293_s28 }
  0x27   : > { %p295_p11 = pnand %p294_p10, %p397_p5 }
  0x28   : > { %p300_p1 = por %p299_p0, %p298_p13 }
  0x29   : > { %p296_p12 = pneg %p295_p11 }
  0x2b   : > { %p301_p2 = pnand %p300_p1, %p296_p12 }
  0x2d   : > { %304 = shalt.err (!%p301_p2)
}
  0x2e   : > { %225 = dma.vmem_to_hbm [thread:$0]  (%p397_p5), %s159_s30, 128, %s161_s24, %s146_s10  }
  0x2f PF: > { %p231_p3 = scmp.ge.s32.totalorder %s341_s16, 2  ;;  %s172_s17 = sand.u32 1, %s329_s13  }
  0x30   : > { %s173_s25 = scalar_lea.sflag [#allocation5], %s172_s17 }
  0x31   : > { %p228_p4 = pnand %p231_p3, %p401_p6 }
  0x33   : > { %p229_p7 = pneg %p228_p4 }
  0x35   : > { %324 = dma.done.wait (%p229_p7), %s173_s25, 128  }
  0x36   : > { %326 = vsyncadd (%p229_p7), %s173_s25, 4294967168  ;;  %p20_p8 = scmp.ge.s32.totalorder %s385_s18, 4   ;;  %s503_s13 = smov %s333_s14 }
  0x37   : > { %s504_s14 = smov %s337_s15  ;;  %s505_s15 = smov %s395_s21 }
  0x38   : > { %s506_s16 = smov %s385_s18  ;;  %22 = sbr.rel (!%p20_p8) target bundleno = 9 (0x9), region = 64 }
  0x3d   :  { %179 = vsyncpa [#allocation5], 1 }
  0x3e   :  { %181 = vsyncpa [#allocation5 + $0x1], 1 }

</bundles_post_ra>
